<compile_context>
chip_gen: v6e
topology: v6e:2x2x1
jax: 0.10.0
libtpu: 0.0.40
codegen_flags: <defaults>
</compile_context>

<pallas_src>
import functools

import jax
import jax.numpy as jnp
from jax.experimental import pallas as pl
from jax.experimental.pallas import tpu as pltpu


# ---------------------------------------------------------------------------
# Kernels
# ---------------------------------------------------------------------------

def _linear_bias_kernel(x_ref, w_ref, b_ref, o_ref, *, apply_relu):
    """One (tm, out_features) stripe of act(x @ W + b). W, b are resident."""
    h = jnp.dot(x_ref[...], w_ref[...], preferred_element_type=jnp.float32)
    h = h + b_ref[...]                      # (1, N) broadcasts over the rows
    if apply_relu:
        h = jnp.maximum(h, 0.0)
    o_ref[...] = h.astype(o_ref.dtype)


def _linear_nobias_kernel(x_ref, w_ref, o_ref, *, apply_relu):
    h = jnp.dot(x_ref[...], w_ref[...], preferred_element_type=jnp.float32)
    if apply_relu:
        h = jnp.maximum(h, 0.0)
    o_ref[...] = h.astype(o_ref.dtype)


def _adj_matmul_kernel(adj_ref, h_ref, o_ref, *, apply_relu, mxu_dtype):
    """One (tm, out_features) stripe of act(adj @ hidden).

    adj_ref : (tm, num_nodes) streamed row stripe (full contraction extent).
    h_ref   : (num_nodes, out_features) resident across the whole grid.
    """
    a = adj_ref[...]
    h = h_ref[...]
    if a.dtype != mxu_dtype:                # static (trace-time) checks
        a = a.astype(mxu_dtype)
    if h.dtype != mxu_dtype:
        h = h.astype(mxu_dtype)
    s = jnp.dot(a, h, preferred_element_type=jnp.float32)  # f32 accumulation
    if apply_relu:
        s = jnp.maximum(s, 0.0)
    o_ref[...] = s.astype(o_ref.dtype)


# ---------------------------------------------------------------------------
# Tile selection
# ---------------------------------------------------------------------------

def _pick_row_tile(m, k, n, stream_bytes, out_bytes, resident_bytes,
                   budget_bytes, tm_max):
    """Largest row tile whose double-buffered working set fits the budget."""
    def fits(tm):
        return (2 * tm * k * stream_bytes       # streamed input stripes (x2)
                + resident_bytes                # resident operand(s)
                + 2 * tm * n * out_bytes        # output stripes (x2)
                ) <= budget_bytes

    tm = min(m, tm_max)
    while tm > 8 and not fits(tm):
        tm = max(8, tm // 2)
    if tm < m and tm % 8:                       # sublane divisibility when tiled
        tm = max(8, tm - tm % 8)
    return tm


# ---------------------------------------------------------------------------
# Wrappers
# ---------------------------------------------------------------------------

def linear(x, weight, bias=None, *, apply_relu=False, out_dtype=None,
           tm=None, tm_max=512, vmem_budget_bytes=20 * 1024 * 1024):
    """act(x @ weight + bias). Weight/bias stay VMEM-resident; rows streamed."""
    m, k = x.shape
    k2, n = weight.shape
    assert k == k2, f"inner dims mismatch: {k} vs {k2}"
    out_dtype = out_dtype or x.dtype

    if tm is None:
        resident = k * n * weight.dtype.itemsize + (n * 4 if bias is not None else 0)
        tm = _pick_row_tile(m, k, n, x.dtype.itemsize,
                            jnp.dtype(out_dtype).itemsize, resident,
                            vmem_budget_bytes, tm_max)
    else:
        tm = min(tm, m)
        if tm < m and tm % 8:
            tm = max(8, tm - tm % 8)

    in_specs = [
        pl.BlockSpec((tm, k), lambda i: (i, 0)),   # x row stripe (streamed)
        pl.BlockSpec((k, n), lambda i: (0, 0)),    # weight (resident)
    ]
    args = [x, weight]
    if bias is not None:
        in_specs.append(pl.BlockSpec((1, n), lambda i: (0, 0)))  # bias (resident)
        args.append(bias.reshape(1, n).astype(jnp.float32))
        kernel = functools.partial(_linear_bias_kernel, apply_relu=apply_relu)
    else:
        kernel = functools.partial(_linear_nobias_kernel, apply_relu=apply_relu)

    return pl.pallas_call(
        kernel,
        out_shape=jax.ShapeDtypeStruct((m, n), out_dtype),
        grid_spec=pltpu.PrefetchScalarGridSpec(
            num_scalar_prefetch=0,
            grid=(pl.cdiv(m, tm),),
            in_specs=in_specs,
            out_specs=pl.BlockSpec((tm, n), lambda i: (i, 0)),
        ),
        compiler_params=pltpu.CompilerParams(dimension_semantics=("parallel",)),
    )(*args)


def adj_matmul(adj, hidden, *, apply_relu=True, out_dtype=jnp.float32,
               mxu_dtype=jnp.bfloat16, tm=None, tm_max=512,
               vmem_budget_bytes=20 * 1024 * 1024):
    """act(adj @ hidden): adj streamed row-stripe-wise (no padded HBM copy),
    hidden VMEM-resident, bf16 MXU operands with f32 accumulation."""
    m, k = adj.shape
    k2, n = hidden.shape
    assert k == k2, f"inner dims mismatch: {k} vs {k2}"

    resident = k * n * hidden.dtype.itemsize
    # TODO(synk): if the resident hidden block ever exceeds the VMEM budget
    # (very large graphs), fall back to a K-tiled accumulator kernel.
    if tm is None:
        tm = _pick_row_tile(m, k, n, adj.dtype.itemsize,
                            jnp.dtype(out_dtype).itemsize, resident,
                            vmem_budget_bytes, tm_max)
    else:
        tm = min(tm, m)
        if tm < m and tm % 8:
            tm = max(8, tm - tm % 8)

    kernel = functools.partial(_adj_matmul_kernel,
                               apply_relu=apply_relu, mxu_dtype=mxu_dtype)
    return pl.pallas_call(
        kernel,
        out_shape=jax.ShapeDtypeStruct((m, n), out_dtype),
        grid_spec=pltpu.PrefetchScalarGridSpec(
            num_scalar_prefetch=0,
            grid=(pl.cdiv(m, tm),),
            in_specs=[
                # adj row stripe: full contraction extent per block, so adj is
                # read from HBM exactly once and never padded.
                pl.BlockSpec((tm, k), lambda i: (i, 0)),
                # hidden: constant block index -> fetched once, stays in VMEM.
                pl.BlockSpec((k, n), lambda i: (0, 0)),
            ],
            out_specs=pl.BlockSpec((tm, n), lambda i: (i, 0)),
        ),
        compiler_params=pltpu.CompilerParams(dimension_semantics=("parallel",)),
    )(adj, hidden)


def graph_convolution(x, adj, weight, bias=None, *, act="relu"):
    """GraphConvolution forward (inference).

    x:      [num_nodes, in_features]
    adj:    [num_nodes, num_nodes] dense adjacency (pass a bf16 adj to also
            halve its HBM read; it is cast to bf16 on the MXU either way)
    weight: [in_features, out_features]  (transpose of torch nn.Linear.weight)
    bias:   [out_features] or None
    Returns (act(adj @ (x @ weight + bias)), adj) with act = ReLU / identity.
    """
    # hidden = Linear(x); emitted directly in bf16 so the HBM-bound adjacency
    # matmul reads half the bytes (f32 accumulation stays inside the kernels).
    hidden = linear(x, weight, bias, apply_relu=False, out_dtype=jnp.bfloat16)
    # TODO(synk): F.dropout (training mode) not implemented — eval-mode identity.
    # TODO(synk): torch.spmm for sparse adj not implemented; adj handled dense.
    # TODO(synk): activations other than ReLU / identity not implemented.
    out = adj_matmul(adj, hidden, apply_relu=(act == "relu"), out_dtype=x.dtype)
    return out, adj


# ---------------------------------------------------------------------------
# Self-test
# ---------------------------------------------------------------------------

if __name__ == "__main__":
    key = jax.random.PRNGKey(0)
    k1, k2, k3, k4 = jax.random.split(key, 4)

    # Small, deliberately non-128-aligned node count: no padding anywhere.
    num_nodes, in_features, out_features = 200, 32, 48

    x = jax.random.normal(k1, (num_nodes, in_features), dtype=jnp.float32)
    adj = jax.random.uniform(k2, (num_nodes, num_nodes), dtype=jnp.float32)
    adj = adj / jnp.sum(adj, axis=1, keepdims=True)      # row-normalized adjacency
    weight = 0.1 * jax.random.normal(k3, (in_features, out_features), jnp.float32)
    bias = 0.1 * jax.random.normal(k4, (out_features,), jnp.float32)

    out, adj_out = graph_convolution(x, adj, weight, bias)
    out = jax.block_until_ready(out)

    # Reference mirroring the kernel numerics: f32 linear, bf16 operands for the
    # adjacency matmul with f32 accumulation, ReLU.
    hidden_f32 = jnp.dot(x, weight, precision=jax.lax.Precision.HIGHEST) + bias
    hidden_bf16 = hidden_f32.astype(jnp.bfloat16)
    ref_bf16 = jnp.maximum(
        jnp.dot(adj.astype(jnp.bfloat16), hidden_bf16,
                preferred_element_type=jnp.float32), 0.0)
    ref_f32 = jnp.maximum(jnp.dot(adj, hidden_f32,
                                  precision=jax.lax.Precision.HIGHEST), 0.0)

    assert out.shape == (num_nodes, out_features)
    assert out.dtype == x.dtype
    assert adj_out is adj
    assert jnp.allclose(out, ref_bf16, atol=2e-3, rtol=2e-2), "mismatch vs bf16 ref"
    assert jnp.allclose(out, ref_f32, atol=2e-2, rtol=2e-2), "mismatch vs f32 ref"

    # Multi-block row-tiling path: hidden stays VMEM-resident across the grid.
    out_tiled = adj_matmul(adj, hidden_bf16, apply_relu=True,
                           out_dtype=x.dtype, tm=40)
    out_tiled = jax.block_until_ready(out_tiled)
    assert jnp.allclose(out_tiled, ref_bf16, atol=2e-3, rtol=2e-2)

    # No-bias path (separate kernel variant, no zero-bias DMA).
    out_nb, _ = graph_convolution(x, adj, weight, None)
    out_nb = jax.block_until_ready(out_nb)
    hidden_nb = jnp.dot(x, weight,
                        precision=jax.lax.Precision.HIGHEST).astype(jnp.bfloat16)
    ref_nb = jnp.maximum(
        jnp.dot(adj.astype(jnp.bfloat16), hidden_nb,
                preferred_element_type=jnp.float32), 0.0)
    assert jnp.allclose(out_nb, ref_nb, atol=2e-3, rtol=2e-2)

    print("KERNEL_OK")
</pallas_src>

<mosaic_0001>
module attributes {stable_mosaic.version = 11 : i64} {
  func.func @_linear_bias_kernel(%arg0: i32, %arg1: memref<200x32xf32, #tpu.memory_space<vmem>>, %arg2: memref<32x48xf32, #tpu.memory_space<vmem>>, %arg3: memref<1x48xf32, #tpu.memory_space<vmem>>, %arg4: memref<200x48xbf16, #tpu.memory_space<vmem>>) attributes {dimension_semantics = [#tpu.dimension_semantics<parallel>], iteration_bounds = array<i64: 1>, scalar_prefetch = 0 : i64, scratch_operands = 0 : i64, tpu.core_type = #tpu.core_type<tc>, window_params = [{transform_indices = @transform_0, window_bounds = array<i64: 200, 32>}, {pipeline_mode = #tpu.pipeline_mode<synchronous>, transform_indices = @transform_1, window_bounds = array<i64: 32, 48>}, {pipeline_mode = #tpu.pipeline_mode<synchronous>, transform_indices = @transform_2, window_bounds = array<i64: 1, 48>}, {transform_indices = @transform_3, window_bounds = array<i64: 200, 48>}]} {
    %c0 = arith.constant 0 : index
    %c0_0 = arith.constant 0 : index
    %0 = vector.load %arg1[%c0, %c0_0] : memref<200x32xf32, #tpu.memory_space<vmem>>, vector<200x32xf32>
    %c0_1 = arith.constant 0 : index
    %c0_2 = arith.constant 0 : index
    %1 = vector.load %arg2[%c0_1, %c0_2] : memref<32x48xf32, #tpu.memory_space<vmem>>, vector<32x48xf32>
    %cst = arith.constant dense<0.000000e+00> : vector<200x48xf32>
    %2 = tpu.matmul %0, %1, %cst {dimension_numbers = #tpu.dot_dimension_numbers<[1], [0], [0], [1], [0, 0, 1, 1], [], []>} : vector<200x32xf32>, vector<32x48xf32>, vector<200x48xf32> -> vector<200x48xf32>
    %c0_3 = arith.constant 0 : index
    %c0_4 = arith.constant 0 : index
    %3 = vector.load %arg3[%c0_3, %c0_4] : memref<1x48xf32, #tpu.memory_space<vmem>>, vector<1x48xf32>
    %4 = vector.broadcast %3 : vector<1x48xf32> to vector<200x48xf32>
    %5 = arith.addf %2, %4 : vector<200x48xf32>
    %6 = arith.truncf %5 : vector<200x48xf32> to vector<200x48xbf16>
    %c0_5 = arith.constant 0 : index
    %c0_6 = arith.constant 0 : index
    %7 = vector.load %arg4[%c0_5, %c0_6] : memref<200x48xbf16, #tpu.memory_space<vmem>>, vector<200x48xbf16>
    tpu.vector_store %arg4[%c0_5, %c0_6], %6 {strides = array<i32>} : memref<200x48xbf16, #tpu.memory_space<vmem>>, vector<200x48xbf16>,
    return
  }
  func.func @transform_0(%arg0: i32) -> (i32, i32) {
    %c0_i32 = arith.constant 0 : i32
    %c0_i32_0 = arith.constant 0 : i32
    return %arg0, %c0_i32 : i32, i32
  }
  func.func @transform_1(%arg0: i32) -> (i32, i32) {
    %c0_i32 = arith.constant 0 : i32
    %c0_i32_0 = arith.constant 0 : i32
    %c0_i32_1 = arith.constant 0 : i32
    return %c0_i32, %c0_i32_0 : i32, i32
  }
  func.func @transform_2(%arg0: i32) -> (i32, i32) {
    %c0_i32 = arith.constant 0 : i32
    %c0_i32_0 = arith.constant 0 : i32
    %c0_i32_1 = arith.constant 0 : i32
    return %c0_i32, %c0_i32_0 : i32, i32
  }
  func.func @transform_3(%arg0: i32) -> (i32, i32) {
    %c0_i32 = arith.constant 0 : i32
    %c0_i32_0 = arith.constant 0 : i32
    return %arg0, %c0_i32 : i32, i32
  }
}

</mosaic_0001>

<bundles_post_ra>
// kernel: tpu_custom_call.1
= control target key start
LH: loop header
LB: loop body
LE: loop exit
PB: predicated region body
PF: predicated region fallthrough
CT: control target
= control target key end

     0   :  { %v645_v0 = vmov 0.0   ;;  %vm50_vm0 = vcmask 261120   ;;  %vm646_vm1 = vmmov 0   ;;  %vm417_vm2 = vcmask 388096   ;;  %s967_s1 = inlined_call_operand.vmem [shape: f32[32,48], index: 1, kind: input, shape index: {}]   ;;  %s968_s0 = inlined_call_operand.vmem [shape: f32[200,32], index: 0, kind: input, shape index: {}]   ;;  %s969_s2 = inlined_call_operand.vmem [shape: f32[1,48], index: 2, kind: input, shape index: {}]   ;;  %s970_s3 = inlined_call_operand.vmem [shape: bf16[200,48], index: 3, kind: output, shape index: {}]  }
   0x1   :  { %552 = vmatprep.subr.mxu0 %v645_v0  ;;  %v42_v1 = vld [vmem:[%s967_s1 + $0x18] sm:$0xff]  ;;  %635 = vmatprep.subr.mxu1 %v645_v0  ;;  %v41_v2 = vld [vmem:[%s967_s1 + $0x10] sm:$0xff]  ;;  %v40_v3 = vld [vmem:[%s967_s1 + $0x8] sm:$0xff] }
   0x2   :  { %553 = vmatpush3.msra.mxu0 %v42_v1  ;;  %639 = vmatpush3.msra.mxu1 %v42_v1  ;;  %v39_v4 = vld [vmem:[%s967_s1] sm:$0xff]  ;;  %v27_v6 = vld [vmem:[%s968_s0 + $0x68] sm:$0xff]  ;;  %v28_v8 = vld [vmem:[%s968_s0 + $0x70] sm:$0xff] }
   0x3   :  { %554 = vmatprep.subr.mxu0 %v645_v0  ;;  %636 = vmatprep.subr.mxu1 %v645_v0  ;;  %v14_v5 = vld [vmem:[%s968_s0] sm:$0xff]  ;;  %v15_v7 = vld [vmem:[%s968_s0 + $0x8] sm:$0xff]  ;;  %v16_v9 = vld [vmem:[%s968_s0 + $0x10] sm:$0xff] }
   0x4   :  { %555 = vmatpush3.msra.mxu0 %v41_v2  ;;  %640 = vmatpush3.msra.mxu1 %v41_v2  ;;  %v29_v10 = vld [vmem:[%s968_s0 + $0x78] sm:$0xff]  ;;  %v30_v12 = vld [vmem:[%s968_s0 + $0x80] sm:$0xff]  ;;  %v31_v14 = vld [vmem:[%s968_s0 + $0x88] sm:$0xff] }
   0x5   :  { %556 = vmatprep.subr.mxu0 %v645_v0  ;;  %637 = vmatprep.subr.mxu1 %v645_v0  ;;  %v17_v11 = vld [vmem:[%s968_s0 + $0x18] sm:$0xff]  ;;  %v18_v13 = vld [vmem:[%s968_s0 + $0x20] sm:$0xff]  ;;  %v19_v15 = vld [vmem:[%s968_s0 + $0x28] sm:$0xff] }
   0x6   :  { %557 = vmatpush3.msra.mxu0 %v40_v3  ;;  %641 = vmatpush3.msra.mxu1 %v40_v3  ;;  %v32_v16 = vld [vmem:[%s968_s0 + $0x90] sm:$0xff]  ;;  %v33_v18 = vld [vmem:[%s968_s0 + $0x98] sm:$0xff]  ;;  %v34_v20 = vld [vmem:[%s968_s0 + $0xa0] sm:$0xff] }
   0x7   :  { %558 = vmatprep.subr.mxu0 %v645_v0  ;;  %560 = vmatprep.mubr.msk.f32.mxu0 %vm646_vm1, %v645_v0  ;;  %v20_v17 = vld [vmem:[%s968_s0 + $0x30] sm:$0xff]  ;;  %v21_v19 = vld [vmem:[%s968_s0 + $0x38] sm:$0xff]  ;;  %v22_v21 = vld [vmem:[%s968_s0 + $0x40] sm:$0xff] }
   0x8   :  { %559 = vmatpush3.msra.mxu0 %v39_v4  ;;  %638 = vmatprep.subr.mxu1 %v645_v0  ;;  %v35_v22 = vld [vmem:[%s968_s0 + $0xa8] sm:$0xff]  ;;  %v36_v24 = vld [vmem:[%s968_s0 + $0xb0] sm:$0xff]  ;;  %v37_v26 = vld [vmem:[%s968_s0 + $0xb8] sm:$0xff] }
   0x9   :  { %561 = vmatmul.mubr.msk.f32.vlgmr.msra.gmra.mxu0 %vm50_vm0, %v14_v5  ;;  %642 = vmatpush3.msra.mxu1 %v39_v4  ;;  %v23_v23 = vld [vmem:[%s968_s0 + $0x48] sm:$0xff]  ;;  %v24_v25 = vld [vmem:[%s968_s0 + $0x50] sm:$0xff]  ;;  %v25_v27 = vld [vmem:[%s968_s0 + $0x58] sm:$0xff] }
   0xa   :  { %599 = vmatprep.mubr.msk.f32.mxu1 %vm646_vm1, %v645_v0  ;;  %563 = vmatprep.mubr.msk.f32.mxu0 %vm646_vm1, %v645_v0  ;;  %v38_v28 = vld [vmem:[%s968_s0 + $0xc0] sm:$0xff] }
   0xb   :  { %600 = vmatmul.mubr.msk.f32.vlgmr.msra.gmra.mxu1 %vm50_vm0, %v27_v6  ;;  %v26_v29 = vld [vmem:[%s968_s0 + $0x60] sm:$0xff] }
   0xc   :  { %602 = vmatprep.mubr.msk.f32.mxu1 %vm646_vm1, %v645_v0  ;;  %v840_v30 = vld [vmem:[%s969_s2] ss:$0 sm:$0xff] }
   0xd   :  { %564 = vmatmul.mubr.msk.f32.gmra.mxu0 %vm50_vm0, %v15_v7 }
   0xe   :  { %566 = vmatprep.mubr.msk.f32.mxu0 %vm646_vm1, %v645_v0 }
   0xf   :  { %603 = vmatmul.mubr.msk.f32.gmra.mxu1 %vm50_vm0, %v28_v8 }
  0x10   :  { %605 = vmatprep.mubr.msk.f32.mxu1 %vm646_vm1, %v645_v0 }
  0x11   :  { %567 = vmatmul.mubr.msk.f32.gmra.mxu0 %vm50_vm0, %v16_v9 }
  0x12   :  { %569 = vmatprep.mubr.msk.f32.mxu0 %vm646_vm1, %v645_v0 }
  0x13   :  { %606 = vmatmul.mubr.msk.f32.gmra.mxu1 %vm50_vm0, %v29_v10 }
  0x14   :  { %608 = vmatprep.mubr.msk.f32.mxu1 %vm646_vm1, %v645_v0 }
  0x15   :  { %570 = vmatmul.mubr.msk.f32.gmra.mxu0 %vm50_vm0, %v17_v11 }
  0x16   :  { %572 = vmatprep.mubr.msk.f32.mxu0 %vm646_vm1, %v645_v0 }
  0x17   :  { %609 = vmatmul.mubr.msk.f32.gmra.mxu1 %vm50_vm0, %v30_v12 }
  0x18   :  { %611 = vmatprep.mubr.msk.f32.mxu1 %vm646_vm1, %v645_v0 }
  0x19   :  { %573 = vmatmul.mubr.msk.f32.gmra.mxu0 %vm50_vm0, %v18_v13 }
  0x1a   :  { %575 = vmatprep.mubr.msk.f32.mxu0 %vm646_vm1, %v645_v0 }
  0x1b   :  { %612 = vmatmul.mubr.msk.f32.gmra.mxu1 %vm50_vm0, %v31_v14 }
  0x1c   :  { %614 = vmatprep.mubr.msk.f32.mxu1 %vm646_vm1, %v645_v0 }
  0x1d   :  { %576 = vmatmul.mubr.msk.f32.gmra.mxu0 %vm50_vm0, %v19_v15 }
  0x1e   :  { %578 = vmatprep.mubr.msk.f32.mxu0 %vm646_vm1, %v645_v0 }
  0x1f   :  { %615 = vmatmul.mubr.msk.f32.gmra.mxu1 %vm50_vm0, %v32_v16 }
  0x20   :  { %617 = vmatprep.mubr.msk.f32.mxu1 %vm646_vm1, %v645_v0 }
  0x21   :  { %579 = vmatmul.mubr.msk.f32.gmra.mxu0 %vm50_vm0, %v20_v17 }
  0x22   :  { %581 = vmatprep.mubr.msk.f32.mxu0 %vm646_vm1, %v645_v0 }
  0x23   :  { %618 = vmatmul.mubr.msk.f32.gmra.mxu1 %vm50_vm0, %v33_v18 }
  0x24   :  { %620 = vmatprep.mubr.msk.f32.mxu1 %vm646_vm1, %v645_v0 }
  0x25   :  { %582 = vmatmul.mubr.msk.f32.gmra.mxu0 %vm50_vm0, %v21_v19 }
  0x26   :  { %584 = vmatprep.mubr.msk.f32.mxu0 %vm646_vm1, %v645_v0 }
  0x27   :  { %621 = vmatmul.mubr.msk.f32.gmra.mxu1 %vm50_vm0, %v34_v20 }
  0x28   :  { %623 = vmatprep.mubr.msk.f32.mxu1 %vm646_vm1, %v645_v0 }
  0x29   :  { %585 = vmatmul.mubr.msk.f32.gmra.mxu0 %vm50_vm0, %v22_v21 }
  0x2a   :  { %587 = vmatprep.mubr.msk.f32.mxu0 %vm646_vm1, %v645_v0 }
  0x2b   :  { %624 = vmatmul.mubr.msk.f32.gmra.mxu1 %vm50_vm0, %v35_v22 }
  0x2c   :  { %626 = vmatprep.mubr.msk.f32.mxu1 %vm646_vm1, %v645_v0 }
  0x2d   :  { %588 = vmatmul.mubr.msk.f32.gmra.mxu0 %vm50_vm0, %v23_v23 }
  0x2e   :  { %590 = vmatprep.mubr.msk.f32.mxu0 %vm646_vm1, %v645_v0 }
  0x2f   :  { %627 = vmatmul.mubr.msk.f32.gmra.mxu1 %vm50_vm0, %v36_v24 }
  0x30   :  { %629 = vmatprep.mubr.msk.f32.mxu1 %vm646_vm1, %v645_v0 }
  0x31   :  { %591 = vmatmul.mubr.msk.f32.gmra.mxu0 %vm50_vm0, %v24_v25 }
  0x32   :  { %593 = vmatprep.mubr.msk.f32.mxu0 %vm646_vm1, %v645_v0 }
  0x33   :  { %630 = vmatmul.mubr.msk.f32.gmra.mxu1 %vm50_vm0, %v37_v26 }
  0x34   :  { %632 = vmatprep.mubr.msk.f32.mxu1 %vm646_vm1, %v645_v0 }
  0x35   :  { %594 = vmatmul.mubr.msk.f32.gmra.mxu0 %vm50_vm0, %v25_v27 }
  0x36   :  { %596 = vmatprep.mubr.msk.f32.mxu0 %vm646_vm1, %v645_v0 }
  0x37   :  { %633 = vmatmul.mubr.msk.f32.gmra.mxu1 %vm50_vm0, %v38_v28 }
  0x39   :  { %597 = vmatmul.mubr.msk.f32.gmra.mxu0 %vm50_vm0, %v26_v29 }
  0xc9   :  { %v192_v31 = vpop.f32.mrf.mxu0 }
  0xca   :  { %v193_v32 = vadd.f32 %v840_v30, %v192_v31 }
  0xcb   :  { %v562_v33 = vpop.f32.mrf.mxu0  ;;  %v257_v34 = vpop.f32.mrf.mxu1 }
  0xcc   :  { %v498_v35 = vpack.c.bf16 %v193_v32, %v193_v32  ;;  %v258_v36 = vadd.f32 %v840_v30, %v257_v34 }
  0xcd   :  { %v197_v37 = vpop.f32.mrf.mxu0  ;;  %v601_v38 = vpop.f32.mrf.mxu1 }
  0xce   :  { %418 = vst.msk [vmem:[%s970_s3] sm:$0xf] %vm417_vm2, %v498_v35  ;;  %v511_v39 = vpack.c.bf16 %v258_v36, %v258_v36  ;;  %v198_v40 = vadd.f32 %v840_v30, %v197_v37 }
  0xcf   :  { %v565_v41 = vpop.f32.mrf.mxu0  ;;  %v262_v42 = vpop.f32.mrf.mxu1 }
  0xd0   :  { %431 = vst.msk [vmem:[%s970_s3 + $0x34] sm:$0xf] %vm417_vm2, %v511_v39  ;;  %v499_v43 = vpack.c.bf16 %v198_v40, %v198_v40  ;;  %v263_v44 = vadd.f32 %v840_v30, %v262_v42 }
  0xd1   :  { %v202_v45 = vpop.f32.mrf.mxu0  ;;  %v604_v46 = vpop.f32.mrf.mxu1 }
  0xd2   :  { %419 = vst.msk [vmem:[%s970_s3 + $0x4] sm:$0xf] %vm417_vm2, %v499_v43  ;;  %v512_v47 = vpack.c.bf16 %v263_v44, %v263_v44  ;;  %v203_v48 = vadd.f32 %v840_v30, %v202_v45 }
  0xd3   :  { %v568_v49 = vpop.f32.mrf.mxu0  ;;  %v267_v50 = vpop.f32.mrf.mxu1 }
  0xd4   :  { %432 = vst.msk [vmem:[%s970_s3 + $0x38] sm:$0xf] %vm417_vm2, %v512_v47  ;;  %v500_v51 = vpack.c.bf16 %v203_v48, %v203_v48  ;;  %v268_v52 = vadd.f32 %v840_v30, %v267_v50 }
  0xd5   :  { %v207_v53 = vpop.f32.mrf.mxu0  ;;  %v607_v54 = vpop.f32.mrf.mxu1 }
  0xd6   :  { %420 = vst.msk [vmem:[%s970_s3 + $0x8] sm:$0xf] %vm417_vm2, %v500_v51  ;;  %v513_v55 = vpack.c.bf16 %v268_v52, %v268_v52  ;;  %v208_v56 = vadd.f32 %v840_v30, %v207_v53 }
  0xd7   :  { %v571_v57 = vpop.f32.mrf.mxu0  ;;  %v272_v58 = vpop.f32.mrf.mxu1 }
  0xd8   :  { %433 = vst.msk [vmem:[%s970_s3 + $0x3c] sm:$0xf] %vm417_vm2, %v513_v55  ;;  %v501_v59 = vpack.c.bf16 %v208_v56, %v208_v56  ;;  %v273_v60 = vadd.f32 %v840_v30, %v272_v58 }
  0xd9   :  { %v212_v61 = vpop.f32.mrf.mxu0  ;;  %v610_v62 = vpop.f32.mrf.mxu1 }
  0xda   :  { %421 = vst.msk [vmem:[%s970_s3 + $0xc] sm:$0xf] %vm417_vm2, %v501_v59  ;;  %v514_v63 = vpack.c.bf16 %v273_v60, %v273_v60  ;;  %v213_v0 = vadd.f32 %v840_v30, %v212_v61 }
  0xdb   :  { %v574_v1 = vpop.f32.mrf.mxu0  ;;  %v277_v2 = vpop.f32.mrf.mxu1 }
  0xdc   :  { %434 = vst.msk [vmem:[%s970_s3 + $0x40] sm:$0xf] %vm417_vm2, %v514_v63  ;;  %v502_v3 = vpack.c.bf16 %v213_v0, %v213_v0  ;;  %v278_v4 = vadd.f32 %v840_v30, %v277_v2 }
  0xdd   :  { %v217_v5 = vpop.f32.mrf.mxu0  ;;  %v613_v6 = vpop.f32.mrf.mxu1 }
  0xde   :  { %422 = vst.msk [vmem:[%s970_s3 + $0x10] sm:$0xf] %vm417_vm2, %v502_v3  ;;  %v515_v7 = vpack.c.bf16 %v278_v4, %v278_v4  ;;  %v218_v8 = vadd.f32 %v840_v30, %v217_v5 }
  0xdf   :  { %v577_v9 = vpop.f32.mrf.mxu0  ;;  %v282_v10 = vpop.f32.mrf.mxu1 }
  0xe0   :  { %435 = vst.msk [vmem:[%s970_s3 + $0x44] sm:$0xf] %vm417_vm2, %v515_v7  ;;  %v503_v11 = vpack.c.bf16 %v218_v8, %v218_v8  ;;  %v283_v12 = vadd.f32 %v840_v30, %v282_v10 }
  0xe1   :  { %v222_v13 = vpop.f32.mrf.mxu0  ;;  %v616_v14 = vpop.f32.mrf.mxu1 }
  0xe2   :  { %423 = vst.msk [vmem:[%s970_s3 + $0x14] sm:$0xf] %vm417_vm2, %v503_v11  ;;  %v516_v15 = vpack.c.bf16 %v283_v12, %v283_v12  ;;  %v223_v16 = vadd.f32 %v840_v30, %v222_v13 }
  0xe3   :  { %v580_v17 = vpop.f32.mrf.mxu0  ;;  %v287_v18 = vpop.f32.mrf.mxu1 }
  0xe4   :  { %436 = vst.msk [vmem:[%s970_s3 + $0x48] sm:$0xf] %vm417_vm2, %v516_v15  ;;  %v504_v19 = vpack.c.bf16 %v223_v16, %v223_v16  ;;  %v288_v20 = vadd.f32 %v840_v30, %v287_v18 }
  0xe5   :  { %v227_v21 = vpop.f32.mrf.mxu0  ;;  %v619_v22 = vpop.f32.mrf.mxu1 }
  0xe6   :  { %424 = vst.msk [vmem:[%s970_s3 + $0x18] sm:$0xf] %vm417_vm2, %v504_v19  ;;  %v517_v23 = vpack.c.bf16 %v288_v20, %v288_v20  ;;  %v228_v24 = vadd.f32 %v840_v30, %v227_v21 }
  0xe7   :  { %v583_v25 = vpop.f32.mrf.mxu0  ;;  %v292_v26 = vpop.f32.mrf.mxu1 }
  0xe8   :  { %437 = vst.msk [vmem:[%s970_s3 + $0x4c] sm:$0xf] %vm417_vm2, %v517_v23  ;;  %v505_v27 = vpack.c.bf16 %v228_v24, %v228_v24  ;;  %v293_v28 = vadd.f32 %v840_v30, %v292_v26 }
  0xe9   :  { %v232_v29 = vpop.f32.mrf.mxu0  ;;  %v622_v31 = vpop.f32.mrf.mxu1 }
  0xea   :  { %425 = vst.msk [vmem:[%s970_s3 + $0x1c] sm:$0xf] %vm417_vm2, %v505_v27  ;;  %v518_v32 = vpack.c.bf16 %v293_v28, %v293_v28  ;;  %v233_v33 = vadd.f32 %v840_v30, %v232_v29 }
  0xeb   :  { %v586_v34 = vpop.f32.mrf.mxu0  ;;  %v297_v35 = vpop.f32.mrf.mxu1 }
  0xec   :  { %438 = vst.msk [vmem:[%s970_s3 + $0x50] sm:$0xf] %vm417_vm2, %v518_v32  ;;  %v506_v36 = vpack.c.bf16 %v233_v33, %v233_v33  ;;  %v298_v37 = vadd.f32 %v840_v30, %v297_v35 }
  0xed   :  { %v237_v38 = vpop.f32.mrf.mxu0  ;;  %v625_v39 = vpop.f32.mrf.mxu1 }
  0xee   :  { %426 = vst.msk [vmem:[%s970_s3 + $0x20] sm:$0xf] %vm417_vm2, %v506_v36  ;;  %v519_v40 = vpack.c.bf16 %v298_v37, %v298_v37  ;;  %v238_v41 = vadd.f32 %v840_v30, %v237_v38 }
  0xef   :  { %v589_v42 = vpop.f32.mrf.mxu0  ;;  %v302_v43 = vpop.f32.mrf.mxu1 }
  0xf0   :  { %439 = vst.msk [vmem:[%s970_s3 + $0x54] sm:$0xf] %vm417_vm2, %v519_v40  ;;  %v507_v44 = vpack.c.bf16 %v238_v41, %v238_v41  ;;  %v303_v45 = vadd.f32 %v840_v30, %v302_v43 }
  0xf1   :  { %v242_v46 = vpop.f32.mrf.mxu0  ;;  %v628_v47 = vpop.f32.mrf.mxu1 }
  0xf2   :  { %427 = vst.msk [vmem:[%s970_s3 + $0x24] sm:$0xf] %vm417_vm2, %v507_v44  ;;  %v520_v48 = vpack.c.bf16 %v303_v45, %v303_v45  ;;  %v243_v49 = vadd.f32 %v840_v30, %v242_v46 }
  0xf3   :  { %v592_v50 = vpop.f32.mrf.mxu0  ;;  %v307_v51 = vpop.f32.mrf.mxu1 }
  0xf4   :  { %440 = vst.msk [vmem:[%s970_s3 + $0x58] sm:$0xf] %vm417_vm2, %v520_v48  ;;  %v508_v52 = vpack.c.bf16 %v243_v49, %v243_v49  ;;  %v308_v53 = vadd.f32 %v840_v30, %v307_v51 }
  0xf5   :  { %v247_v54 = vpop.f32.mrf.mxu0  ;;  %v631_v55 = vpop.f32.mrf.mxu1 }
  0xf6   :  { %428 = vst.msk [vmem:[%s970_s3 + $0x28] sm:$0xf] %vm417_vm2, %v508_v52  ;;  %v521_v56 = vpack.c.bf16 %v308_v53, %v308_v53  ;;  %v248_v57 = vadd.f32 %v840_v30, %v247_v54 }
  0xf7   :  { %v595_v58 = vpop.f32.mrf.mxu0  ;;  %v312_v59 = vpop.f32.mrf.mxu1 }
  0xf8   :  { %441 = vst.msk [vmem:[%s970_s3 + $0x5c] sm:$0xf] %vm417_vm2, %v521_v56  ;;  %v509_v60 = vpack.c.bf16 %v248_v57, %v248_v57  ;;  %v313_v61 = vadd.f32 %v840_v30, %v312_v59 }
  0xf9   :  { %v252_v62 = vpop.f32.mrf.mxu0  ;;  %v634_v63 = vpop.f32.mrf.mxu1 }
  0xfa   :  { %429 = vst.msk [vmem:[%s970_s3 + $0x2c] sm:$0xf] %vm417_vm2, %v509_v60  ;;  %v522_v0 = vpack.c.bf16 %v313_v61, %v313_v61  ;;  %v253_v1 = vadd.f32 %v840_v30, %v252_v62 }
  0xfb   :  { %v598_v2 = vpop.f32.mrf.mxu0 }
  0xfc   :  { %442 = vst.msk [vmem:[%s970_s3 + $0x60] sm:$0xf] %vm417_vm2, %v522_v0  ;;  %v510_v3 = vpack.c.bf16 %v253_v1, %v253_v1 }
  0xfe   :  { %430 = vst.msk [vmem:[%s970_s3 + $0x30] sm:$0xf] %vm417_vm2, %v510_v3 }

</bundles_post_ra>
